<compile_context>
chip_gen: v7x
topology: tpu7x:2x2x1
jax: 0.10.0
libtpu: 0.0.40
codegen_flags: <defaults>
</compile_context>

<pallas_src>
import jax
import jax.numpy as jnp
from jax.experimental import pallas as pl
from jax.experimental.pallas import tpu as pltpu

LANE = 128
Z_PAD = 64            # packed mu|sigma occupies exactly one 128-lane slab


def _round_up(n, m):
    return (n + m - 1) // m * m


# -----------------------------------------------------------------------------
# Kernel: full forward (encode -> reparameterize -> decode) for one batch tile.
# -----------------------------------------------------------------------------
def vae_forward_kernel(
    x_ref, eps_ref,
    w1_ref, b1_ref,        # img2hid                 [IN_PAD, H_PAD] bf16, [1, H_PAD] f32
    wms_ref, bms_ref,      # hid2mu | hid2sigma      [H_PAD, 2*Z_PAD] bf16, [1, 2*Z_PAD] f32
    w2s_ref, b2_ref,       # z2hid, stacked twice    [2*Z_PAD, H_PAD] bf16, [1, H_PAD] f32
    w3_ref, b3_ref,        # hid2img                 [H_PAD, IN_PAD] bf16, [1, IN_PAD] f32
    xrec_ref, musig_ref,
):
    f32 = jnp.float32
    bf16 = jnp.bfloat16

    # encode: h = relu(x @ W1 + b1) -- bf16 MXU operands, f32 accumulate/elementwise.
    x = x_ref[...]
    h = jnp.dot(x.astype(bf16), w1_ref[...], preferred_element_type=f32) + b1_ref[...]
    h = jnp.maximum(h, 0.0)

    # fused mu|sigma projection: one MXU pass, one lane-dense [tm, 128] f32 store.
    musig = jnp.dot(h.astype(bf16), wms_ref[...], preferred_element_type=f32) + bms_ref[...]
    musig_ref[...] = musig

    # reparameterize + z2hid, fused without unpacking mu/sigma:
    #   z @ W2 = mu @ W2 + (sigma * eps) @ W2 = (musig * [1|eps]) @ [W2 ; W2]
    # [1|eps] is built in-kernel (constant half never touches HBM).
    eps = eps_ref[...]                                        # [tm, Z_PAD] f32
    eps_aug = jnp.concatenate([jnp.ones_like(eps), eps], axis=-1)   # [tm, 2*Z_PAD]
    zw = musig * eps_aug                                      # f32 elementwise

    h2 = jnp.dot(zw.astype(bf16), w2s_ref[...], preferred_element_type=f32) + b2_ref[...]
    h2 = jnp.maximum(h2, 0.0)

    # decode: x_rec = sigmoid(h2 @ W3 + b3), sigmoid via EUP-resident tanh.
    logits = jnp.dot(h2.astype(bf16), w3_ref[...], preferred_element_type=f32) + b3_ref[...]
    xrec_ref[...] = 0.5 * (jnp.tanh(0.5 * logits) + 1.0)


# -----------------------------------------------------------------------------
# Packing: zero-pad unpadded [in, out] weights into the lane-aligned layout.
# Weights in bf16 (MXU operands), biases in f32 (elementwise path).
# -----------------------------------------------------------------------------
def pack_params(p, input_dim, h_dim, z_dim):
    in_pad = _round_up(input_dim, LANE)
    h_pad = _round_up(h_dim, LANE)
    f32, bf16 = jnp.float32, jnp.bfloat16

    w1 = jnp.zeros((in_pad, h_pad), bf16).at[:input_dim, :h_dim].set(
        p["w1"].astype(bf16))
    b1 = jnp.zeros((1, h_pad), f32).at[:, :h_dim].set(p["b1"])

    wms = (jnp.zeros((h_pad, 2 * Z_PAD), bf16)
           .at[:h_dim, :z_dim].set(p["wmu"].astype(bf16))
           .at[:h_dim, Z_PAD:Z_PAD + z_dim].set(p["wsig"].astype(bf16)))
    bms = (jnp.zeros((1, 2 * Z_PAD), f32)
           .at[:, :z_dim].set(p["bmu"])
           .at[:, Z_PAD:Z_PAD + z_dim].set(p["bsig"]))

    w2s = (jnp.zeros((2 * Z_PAD, h_pad), bf16)
           .at[:z_dim, :h_dim].set(p["w2"].astype(bf16))
           .at[Z_PAD:Z_PAD + z_dim, :h_dim].set(p["w2"].astype(bf16)))
    b2 = jnp.zeros((1, h_pad), f32).at[:, :h_dim].set(p["b2"])

    w3 = jnp.zeros((h_pad, in_pad), bf16).at[:h_dim, :input_dim].set(
        p["w3"].astype(bf16))
    b3 = jnp.zeros((1, in_pad), f32).at[:, :input_dim].set(p["b3"])

    return (w1, b1, wms, bms, w2s, b2, w3, b3)


# -----------------------------------------------------------------------------
# Tile selection: big tiles, but >= 4 grid steps when the batch allows so each
# v7x TensorCore gets >= 2 tiles (megacore split + per-core double buffering).
# -----------------------------------------------------------------------------
def _choose_tile(B, block_batch):
    b8 = _round_up(max(B, 8), 8)
    tm = min(block_batch, b8)
    if b8 >= 4 * 8:
        tm = min(tm, _round_up(pl.cdiv(B, 4), 8))
    tm = max(tm, 8)
    bp = _round_up(B, tm)
    return tm, bp


# -----------------------------------------------------------------------------
# Wrapper
# -----------------------------------------------------------------------------
def vae_forward(x, eps, params, *, block_batch=512):
    """x: [B, input_dim], eps: [B, z_dim], params: dict of unpadded f32 weights."""
    B, input_dim = x.shape
    z_dim = eps.shape[1]
    h_dim = params["w1"].shape[1]
    assert z_dim <= Z_PAD

    in_pad = _round_up(input_dim, LANE)
    h_pad = _round_up(h_dim, LANE)

    tm, bp = _choose_tile(B, block_batch)
    grid = (bp // tm,)

    # x: avoid a full repack when the feature dim is already lane-aligned.
    if in_pad == input_dim:
        x_p = x if bp == B else jnp.pad(x, ((0, bp - B), (0, 0)))
    else:
        x_p = jnp.zeros((bp, in_pad), jnp.float32).at[:B, :input_dim].set(x)
    x_p = x_p.astype(jnp.float32)

    # eps: pad to Z_PAD lanes only (tiny array); the [1|...] half is built in-kernel.
    eps_p = jnp.zeros((bp, Z_PAD), jnp.float32).at[:B, :z_dim].set(eps)

    packed = pack_params(params, input_dim, h_dim, z_dim)

    def act_spec(cols):                    # batch-tiled activations / outputs
        return pl.BlockSpec((tm, cols), lambda i: (i, 0))

    def res_spec(shape):                   # weights resident across the grid
        return pl.BlockSpec(shape, lambda i: (0, 0))

    in_specs = [
        act_spec(in_pad),                                        # x
        act_spec(Z_PAD),                                         # eps
        res_spec((in_pad, h_pad)), res_spec((1, h_pad)),         # w1, b1
        res_spec((h_pad, 2 * Z_PAD)), res_spec((1, 2 * Z_PAD)),  # wms, bms
        res_spec((2 * Z_PAD, h_pad)), res_spec((1, h_pad)),      # w2s, b2
        res_spec((h_pad, in_pad)), res_spec((1, in_pad)),        # w3, b3
    ]
    out_specs = (act_spec(in_pad), act_spec(2 * Z_PAD))

    flops = 2 * bp * (in_pad * h_pad + h_pad * 2 * Z_PAD
                      + 2 * Z_PAD * h_pad + h_pad * in_pad)
    weight_bytes = sum(a.size * a.dtype.itemsize for a in packed)
    bytes_accessed = (4 * (x_p.size + eps_p.size)            # inputs (f32)
                      + weight_bytes                          # bf16 weights / f32 biases
                      + 4 * (bp * in_pad + bp * 2 * Z_PAD))   # outputs (f32)
    cost = pl.CostEstimate(flops=flops,
                           transcendentals=bp * in_pad,       # tanh in decode
                           bytes_accessed=bytes_accessed)

    xrec_p, musig = pl.pallas_call(
        vae_forward_kernel,
        out_shape=(jax.ShapeDtypeStruct((bp, in_pad), jnp.float32),
                   jax.ShapeDtypeStruct((bp, 2 * Z_PAD), jnp.float32)),
        grid=grid,
        in_specs=in_specs,
        out_specs=out_specs,
        compiler_params=pltpu.CompilerParams(
            dimension_semantics=("parallel",)),  # v7x: split batch tiles across TCs
        cost_estimate=cost,
    )(x_p, eps_p, *packed)

    x_rec = xrec_p[:B, :input_dim]
    mu = musig[:B, :z_dim]
    sigma = musig[:B, Z_PAD:Z_PAD + z_dim]
    return x_rec, mu, sigma


# -----------------------------------------------------------------------------
# Init + pure-JAX reference
# -----------------------------------------------------------------------------
def init_params(key, input_dim, h_dim, z_dim):
    """Deterministic synthetic init. Weights stored [in, out], biases [1, out]."""
    keys = jax.random.split(key, 10)

    def lin(kw, kb, fan_in, fan_out):
        bound = 1.0 / jnp.sqrt(fan_in)   # PyTorch nn.Linear default init
        w = jax.random.uniform(kw, (fan_in, fan_out), jnp.float32, -bound, bound)
        b = jax.random.uniform(kb, (1, fan_out), jnp.float32, -bound, bound)
        return w, b

    w1, b1 = lin(keys[0], keys[1], input_dim, h_dim)      # img2hid
    wmu, bmu = lin(keys[2], keys[3], h_dim, z_dim)        # hid2mu
    wsig, bsig = lin(keys[4], keys[5], h_dim, z_dim)      # hid2sigma
    w2, b2 = lin(keys[6], keys[7], z_dim, h_dim)          # z2hid
    w3, b3 = lin(keys[8], keys[9], h_dim, input_dim)      # hid2img
    return dict(w1=w1, b1=b1, wmu=wmu, bmu=bmu, wsig=wsig, bsig=bsig,
                w2=w2, b2=b2, w3=w3, b3=b3)


def vae_forward_ref(x, eps, p):
    h = jnp.maximum(x @ p["w1"] + p["b1"], 0.0)
    mu = h @ p["wmu"] + p["bmu"]
    sigma = h @ p["wsig"] + p["bsig"]
    z = mu + sigma * eps
    h2 = jnp.maximum(z @ p["w2"] + p["b2"], 0.0)
    xrec = jax.nn.sigmoid(h2 @ p["w3"] + p["b3"])
    return xrec, mu, sigma


if __name__ == "__main__":
    INPUT_DIM, H_DIM, Z_DIM = 256, 200, 20   # module defaults (flattened image input)

    key = jax.random.PRNGKey(0)
    k_x, k_eps, k_params = jax.random.split(key, 3)
    params = init_params(k_params, INPUT_DIM, H_DIM, Z_DIM)
    fwd = jax.jit(vae_forward)

    ok = True
    for B in (8, 300):   # small batch (grid=1) and multi-tile batch (grid=4)
        kx, ke = jax.random.split(jax.random.fold_in(k_x, B))
        x = jax.random.uniform(kx, (B, INPUT_DIM), jnp.float32)
        eps = jax.random.normal(ke, (B, Z_DIM), jnp.float32)

        x_rec, mu, sigma = jax.block_until_ready(fwd(x, eps, params))
        x_rec_r, mu_r, sigma_r = vae_forward_ref(x, eps, params)

        assert x_rec.shape == (B, INPUT_DIM)
        assert mu.shape == (B, Z_DIM) and sigma.shape == (B, Z_DIM)
        # 2e-2 tolerance: bf16 MXU operands (f32 accumulate) + the reassociated
        # decode z@W2 = mu@W2 + (sigma*eps)@W2 vs. the all-f32 reference.
        ok &= bool(jnp.allclose(x_rec, x_rec_r, atol=2e-2, rtol=2e-2))
        ok &= bool(jnp.allclose(mu, mu_r, atol=2e-2, rtol=2e-2))
        ok &= bool(jnp.allclose(sigma, sigma_r, atol=2e-2, rtol=2e-2))

    assert ok, "mismatch vs pure-JAX reference"
    print("KERNEL_OK")
</pallas_src>

<mosaic_0001>
module attributes {stable_mosaic.version = 11 : i64} {
  func.func @vae_forward_kernel(%arg0: i32, %arg1: memref<8x256xf32, #tpu.memory_space<vmem>>, %arg2: memref<8x64xf32, #tpu.memory_space<vmem>>, %arg3: memref<256x256xbf16, #tpu.memory_space<vmem>>, %arg4: memref<1x256xf32, #tpu.memory_space<vmem>>, %arg5: memref<256x128xbf16, #tpu.memory_space<vmem>>, %arg6: memref<1x128xf32, #tpu.memory_space<vmem>>, %arg7: memref<128x256xbf16, #tpu.memory_space<vmem>>, %arg8: memref<1x256xf32, #tpu.memory_space<vmem>>, %arg9: memref<256x256xbf16, #tpu.memory_space<vmem>>, %arg10: memref<1x256xf32, #tpu.memory_space<vmem>>, %arg11: memref<8x256xf32, #tpu.memory_space<vmem>>, %arg12: memref<8x128xf32, #tpu.memory_space<vmem>>) attributes {dimension_semantics = [#tpu.dimension_semantics<parallel>], iteration_bounds = array<i64: 1>, scalar_prefetch = 0 : i64, scratch_operands = 0 : i64, tpu.core_type = #tpu.core_type<tc>, window_params = [{transform_indices = @transform_0, window_bounds = array<i64: 8, 256>}, {transform_indices = @transform_1, window_bounds = array<i64: 8, 64>}, {pipeline_mode = #tpu.pipeline_mode<synchronous>, transform_indices = @transform_2, window_bounds = array<i64: 256, 256>}, {pipeline_mode = #tpu.pipeline_mode<synchronous>, transform_indices = @transform_3, window_bounds = array<i64: 1, 256>}, {pipeline_mode = #tpu.pipeline_mode<synchronous>, transform_indices = @transform_4, window_bounds = array<i64: 256, 128>}, {pipeline_mode = #tpu.pipeline_mode<synchronous>, transform_indices = @transform_5, window_bounds = array<i64: 1, 128>}, {pipeline_mode = #tpu.pipeline_mode<synchronous>, transform_indices = @transform_6, window_bounds = array<i64: 128, 256>}, {pipeline_mode = #tpu.pipeline_mode<synchronous>, transform_indices = @transform_7, window_bounds = array<i64: 1, 256>}, {pipeline_mode = #tpu.pipeline_mode<synchronous>, transform_indices = @transform_8, window_bounds = array<i64: 256, 256>}, {pipeline_mode = #tpu.pipeline_mode<synchronous>, transform_indices = @transform_9, window_bounds = array<i64: 1, 256>}, {transform_indices = @transform_10, window_bounds = array<i64: 8, 256>}, {transform_indices = @transform_11, window_bounds = array<i64: 8, 128>}]} {
    %c0 = arith.constant 0 : index
    %c0_0 = arith.constant 0 : index
    %0 = vector.load %arg1[%c0, %c0_0] : memref<8x256xf32, #tpu.memory_space<vmem>>, vector<8x256xf32>
    %1 = arith.truncf %0 : vector<8x256xf32> to vector<8x256xbf16>
    %c0_1 = arith.constant 0 : index
    %c0_2 = arith.constant 0 : index
    %2 = vector.load %arg3[%c0_1, %c0_2] : memref<256x256xbf16, #tpu.memory_space<vmem>>, vector<256x256xbf16>
    %cst = arith.constant dense<0.000000e+00> : vector<8x256xf32>
    %3 = tpu.matmul %1, %2, %cst {dimension_numbers = #tpu.dot_dimension_numbers<[1], [0], [0], [1], [0, 0, 1, 1], [], []>} : vector<8x256xbf16>, vector<256x256xbf16>, vector<8x256xf32> -> vector<8x256xf32>
    %c0_3 = arith.constant 0 : index
    %c0_4 = arith.constant 0 : index
    %4 = vector.load %arg4[%c0_3, %c0_4] : memref<1x256xf32, #tpu.memory_space<vmem>>, vector<1x256xf32>
    %5 = vector.broadcast %4 : vector<1x256xf32> to vector<8x256xf32>
    %6 = arith.addf %3, %5 : vector<8x256xf32>
    %cst_5 = arith.constant 0.000000e+00 : f32
    %7 = vector.broadcast %cst_5 : f32 to vector<8x256xf32>
    %8 = arith.maximumf %6, %7 : vector<8x256xf32>
    %9 = arith.truncf %8 : vector<8x256xf32> to vector<8x256xbf16>
    %c0_6 = arith.constant 0 : index
    %c0_7 = arith.constant 0 : index
    %10 = vector.load %arg5[%c0_6, %c0_7] : memref<256x128xbf16, #tpu.memory_space<vmem>>, vector<256x128xbf16>
    %cst_8 = arith.constant dense<0.000000e+00> : vector<8x128xf32>
    %11 = tpu.matmul %9, %10, %cst_8 {dimension_numbers = #tpu.dot_dimension_numbers<[1], [0], [0], [1], [0, 0, 1, 1], [], []>} : vector<8x256xbf16>, vector<256x128xbf16>, vector<8x128xf32> -> vector<8x128xf32>
    %c0_9 = arith.constant 0 : index
    %c0_10 = arith.constant 0 : index
    %12 = vector.load %arg6[%c0_9, %c0_10] : memref<1x128xf32, #tpu.memory_space<vmem>>, vector<1x128xf32>
    %13 = vector.broadcast %12 : vector<1x128xf32> to vector<8x128xf32>
    %14 = arith.addf %11, %13 : vector<8x128xf32>
    %c0_11 = arith.constant 0 : index
    %c0_12 = arith.constant 0 : index
    %15 = vector.load %arg12[%c0_11, %c0_12] : memref<8x128xf32, #tpu.memory_space<vmem>>, vector<8x128xf32>
    tpu.vector_store %arg12[%c0_11, %c0_12], %14 {strides = array<i32>} : memref<8x128xf32, #tpu.memory_space<vmem>>, vector<8x128xf32>,
    %c0_13 = arith.constant 0 : index
    %c0_14 = arith.constant 0 : index
    %16 = vector.load %arg2[%c0_13, %c0_14] : memref<8x64xf32, #tpu.memory_space<vmem>>, vector<8x64xf32>
    %cst_15 = arith.constant 1.000000e+00 : f32
    %17 = vector.broadcast %cst_15 : f32 to vector<8x64xf32>
    %18 = tpu.concatenate %17, %16 in 1 : vector<8x64xf32>, vector<8x64xf32> -> vector<8x128xf32>
    %19 = arith.mulf %14, %18 : vector<8x128xf32>
    %20 = arith.truncf %19 : vector<8x128xf32> to vector<8x128xbf16>
    %c0_16 = arith.constant 0 : index
    %c0_17 = arith.constant 0 : index
    %21 = vector.load %arg7[%c0_16, %c0_17] : memref<128x256xbf16, #tpu.memory_space<vmem>>, vector<128x256xbf16>
    %cst_18 = arith.constant dense<0.000000e+00> : vector<8x256xf32>
    %22 = tpu.matmul %20, %21, %cst_18 {dimension_numbers = #tpu.dot_dimension_numbers<[1], [0], [0], [1], [0, 0, 1, 1], [], []>} : vector<8x128xbf16>, vector<128x256xbf16>, vector<8x256xf32> -> vector<8x256xf32>
    %c0_19 = arith.constant 0 : index
    %c0_20 = arith.constant 0 : index
    %23 = vector.load %arg8[%c0_19, %c0_20] : memref<1x256xf32, #tpu.memory_space<vmem>>, vector<1x256xf32>
    %24 = vector.broadcast %23 : vector<1x256xf32> to vector<8x256xf32>
    %25 = arith.addf %22, %24 : vector<8x256xf32>
    %cst_21 = arith.constant 0.000000e+00 : f32
    %26 = vector.broadcast %cst_21 : f32 to vector<8x256xf32>
    %27 = arith.maximumf %25, %26 : vector<8x256xf32>
    %28 = arith.truncf %27 : vector<8x256xf32> to vector<8x256xbf16>
    %c0_22 = arith.constant 0 : index
    %c0_23 = arith.constant 0 : index
    %29 = vector.load %arg9[%c0_22, %c0_23] : memref<256x256xbf16, #tpu.memory_space<vmem>>, vector<256x256xbf16>
    %cst_24 = arith.constant dense<0.000000e+00> : vector<8x256xf32>
    %30 = tpu.matmul %28, %29, %cst_24 {dimension_numbers = #tpu.dot_dimension_numbers<[1], [0], [0], [1], [0, 0, 1, 1], [], []>} : vector<8x256xbf16>, vector<256x256xbf16>, vector<8x256xf32> -> vector<8x256xf32>
    %c0_25 = arith.constant 0 : index
    %c0_26 = arith.constant 0 : index
    %31 = vector.load %arg10[%c0_25, %c0_26] : memref<1x256xf32, #tpu.memory_space<vmem>>, vector<1x256xf32>
    %32 = vector.broadcast %31 : vector<1x256xf32> to vector<8x256xf32>
    %33 = arith.addf %30, %32 : vector<8x256xf32>
    %cst_27 = arith.constant 5.000000e-01 : f32
    %34 = vector.broadcast %cst_27 : f32 to vector<8x256xf32>
    %35 = arith.mulf %34, %33 : vector<8x256xf32>
    %36 = math.tanh %35 : vector<8x256xf32>
    %cst_28 = arith.constant 1.000000e+00 : f32
    %37 = vector.broadcast %cst_28 : f32 to vector<8x256xf32>
    %38 = arith.addf %36, %37 : vector<8x256xf32>
    %cst_29 = arith.constant 5.000000e-01 : f32
    %39 = vector.broadcast %cst_29 : f32 to vector<8x256xf32>
    %40 = arith.mulf %39, %38 : vector<8x256xf32>
    %c0_30 = arith.constant 0 : index
    %c0_31 = arith.constant 0 : index
    %41 = vector.load %arg11[%c0_30, %c0_31] : memref<8x256xf32, #tpu.memory_space<vmem>>, vector<8x256xf32>
    tpu.vector_store %arg11[%c0_30, %c0_31], %40 {strides = array<i32>} : memref<8x256xf32, #tpu.memory_space<vmem>>, vector<8x256xf32>,
    return
  }
  func.func @transform_0(%arg0: i32) -> (i32, i32) {
    %c0_i32 = arith.constant 0 : i32
    %c0_i32_0 = arith.constant 0 : i32
    return %arg0, %c0_i32 : i32, i32
  }
  func.func @transform_1(%arg0: i32) -> (i32, i32) {
    %c0_i32 = arith.constant 0 : i32
    %c0_i32_0 = arith.constant 0 : i32
    return %arg0, %c0_i32 : i32, i32
  }
  func.func @transform_2(%arg0: i32) -> (i32, i32) {
    %c0_i32 = arith.constant 0 : i32
    %c0_i32_0 = arith.constant 0 : i32
    %c0_i32_1 = arith.constant 0 : i32
    return %c0_i32, %c0_i32_0 : i32, i32
  }
  func.func @transform_3(%arg0: i32) -> (i32, i32) {
    %c0_i32 = arith.constant 0 : i32
    %c0_i32_0 = arith.constant 0 : i32
    %c0_i32_1 = arith.constant 0 : i32
    return %c0_i32, %c0_i32_0 : i32, i32
  }
  func.func @transform_4(%arg0: i32) -> (i32, i32) {
    %c0_i32 = arith.constant 0 : i32
    %c0_i32_0 = arith.constant 0 : i32
    %c0_i32_1 = arith.constant 0 : i32
    return %c0_i32, %c0_i32_0 : i32, i32
  }
  func.func @transform_5(%arg0: i32) -> (i32, i32) {
    %c0_i32 = arith.constant 0 : i32
    %c0_i32_0 = arith.constant 0 : i32
    %c0_i32_1 = arith.constant 0 : i32
    return %c0_i32, %c0_i32_0 : i32, i32
  }
  func.func @transform_6(%arg0: i32) -> (i32, i32) {
    %c0_i32 = arith.constant 0 : i32
    %c0_i32_0 = arith.constant 0 : i32
    %c0_i32_1 = arith.constant 0 : i32
    return %c0_i32, %c0_i32_0 : i32, i32
  }
  func.func @transform_7(%arg0: i32) -> (i32, i32) {
    %c0_i32 = arith.constant 0 : i32
    %c0_i32_0 = arith.constant 0 : i32
    %c0_i32_1 = arith.constant 0 : i32
    return %c0_i32, %c0_i32_0 : i32, i32
  }
  func.func @transform_8(%arg0: i32) -> (i32, i32) {
    %c0_i32 = arith.constant 0 : i32
    %c0_i32_0 = arith.constant 0 : i32
    %c0_i32_1 = arith.constant 0 : i32
    return %c0_i32, %c0_i32_0 : i32, i32
  }
  func.func @transform_9(%arg0: i32) -> (i32, i32) {
    %c0_i32 = arith.constant 0 : i32
    %c0_i32_0 = arith.constant 0 : i32
    %c0_i32_1 = arith.constant 0 : i32
    return %c0_i32, %c0_i32_0 : i32, i32
  }
  func.func @transform_10(%arg0: i32) -> (i32, i32) {
    %c0_i32 = arith.constant 0 : i32
    %c0_i32_0 = arith.constant 0 : i32
    return %arg0, %c0_i32 : i32, i32
  }
  func.func @transform_11(%arg0: i32) -> (i32, i32) {
    %c0_i32 = arith.constant 0 : i32
    %c0_i32_0 = arith.constant 0 : i32
    return %arg0, %c0_i32 : i32, i32
  }
}

</mosaic_0001>

<bundles_post_ra>
// kernel: vae_forward.1
= control target key start
LH: loop header
LB: loop body
LE: loop exit
PB: predicated region body
PF: predicated region fallthrough
CT: control target
= control target key end

     0   :  { %s1586_s0 = inlined_call_operand.vmem [shape: f32[8,256], index: 0, kind: input, shape index: {}]   ;;  %s1587_s1 = inlined_call_operand.vmem [shape: f32[8,64], index: 1, kind: input, shape index: {}]   ;;  %s1588_s2 = inlined_call_operand.vmem [shape: bf16[256,256], index: 2, kind: input, shape index: {}]   ;;  %s1589_s3 = inlined_call_operand.vmem [shape: f32[1,256], index: 3, kind: input, shape index: {}]   ;;  %s1590_s4 = inlined_call_operand.vmem [shape: bf16[256,128], index: 4, kind: input, shape index: {}]   ;;  %s1591_s5 = inlined_call_operand.vmem [shape: f32[1,128], index: 5, kind: input, shape index: {}]   ;;  %s1592_s6 = inlined_call_operand.vmem [shape: bf16[128,256], index: 6, kind: input, shape index: {}]   ;;  %s1593_s7 = inlined_call_operand.vmem [shape: f32[1,256], index: 7, kind: input, shape index: {}]   ;;  %s1594_s8 = inlined_call_operand.vmem [shape: bf16[256,256], index: 8, kind: input, shape index: {}]   ;;  %s1595_s9 = inlined_call_operand.vmem [shape: f32[1,256], index: 9, kind: input, shape index: {}]   ;;  %s1596_s10 = inlined_call_operand.hbm [shape: f32[8,256], index: 10, kind: output, shape index: {0}]   ;;  %s1597_s11 = inlined_call_operand.vmem [shape: f32[8,128], index: 11, kind: output, shape index: {1}]  }
   0x1   :  { %v1025_v0 = vld [vmem:[%s1588_s2 + $0x4] ss:$8 sps:$4 sm:$0xff]   ;;  %v1027_v1 = vld [vmem:[%s1588_s2] ss:$8 sps:$4 sm:$0xff]   ;;  %v1028_v2 = vld [vmem:[%s1588_s2 + $0x14] ss:$8 sps:$4 sm:$0xff]  }
   0x2   :  { %247 = vmatprep.subr.bf16.mxu0 %v1025_v0  ;;  %v1030_v3 = vld [vmem:[%s1588_s2 + $0x10] ss:$8 sps:$4 sm:$0xff]   ;;  %v1031_v4 = vld [vmem:[%s1588_s2 + $0x24] ss:$8 sps:$4 sm:$0xff]   ;;  %v1033_v5 = vld [vmem:[%s1588_s2 + $0x20] ss:$8 sps:$4 sm:$0xff]  }
   0x3   :  { %248 = vmatpush1.bf16.msra.mxu0 %v1027_v1  ;;  %v1034_v6 = vld [vmem:[%s1588_s2 + $0x34] ss:$8 sps:$4 sm:$0xff]   ;;  %v1036_v7 = vld [vmem:[%s1588_s2 + $0x30] ss:$8 sps:$4 sm:$0xff]   ;;  %v1037_v8 = vld [vmem:[%s1588_s2 + $0x44] ss:$8 sps:$4 sm:$0xff]  }
   0x4   :  { %249 = vmatprep.subr.bf16.mxu0 %v1028_v2  ;;  %v1039_v9 = vld [vmem:[%s1588_s2 + $0x40] ss:$8 sps:$4 sm:$0xff]   ;;  %v1040_v10 = vld [vmem:[%s1588_s2 + $0x54] ss:$8 sps:$4 sm:$0xff]   ;;  %v1042_v11 = vld [vmem:[%s1588_s2 + $0x50] ss:$8 sps:$4 sm:$0xff]  }
   0x5   :  { %v1043_v12 = vld [vmem:[%s1588_s2 + $0x64] ss:$8 sps:$4 sm:$0xff]   ;;  %v1045_v13 = vld [vmem:[%s1588_s2 + $0x60] ss:$8 sps:$4 sm:$0xff]   ;;  %v1046_v15 = vld [vmem:[%s1588_s2 + $0x74] ss:$8 sps:$4 sm:$0xff]  }
   0x6   :  { %v40_v14 = vld [vmem:[%s1586_s0 + $0x8] sm:$0xff]  ;;  %v1073_v17 = vld [vmem:[%s1590_s4 + $0x40] sm:$0xff]   ;;  %v1048_v20 = vld [vmem:[%s1588_s2 + $0x70] ss:$8 sps:$4 sm:$0xff]  }
   0x7   :  { %250 = vmatpush1.bf16.msra.mxu0 %v1030_v3  ;;  %v42_v16 = vpack.c.bf16 %v40_v14, %v40_v14  ;;  %v1074_v18 = vld [vmem:[%s1590_s4] sm:$0xff]   ;;  %v1075_v19 = vld [vmem:[%s1590_s4 + $0x48] sm:$0xff]   ;;  %1000 = vmatprep.subr.bf16.mxu1 %v1073_v17  ;;  %v1077_v22 = vld [vmem:[%s1590_s4 + $0x50] sm:$0xff]  }
   0x8   :  { %251 = vmatprep.subr.bf16.mxu0 %v1031_v4  ;;  %1001 = vmatpush3.bf16.msra.mxu1 %v1074_v18  ;;  %v1076_v21 = vld [vmem:[%s1590_s4 + $0x8] sm:$0xff]   ;;  %v1078_v25 = vld [vmem:[%s1590_s4 + $0x10] sm:$0xff]   ;;  %v1079_v26 = vld [vmem:[%s1590_s4 + $0x58] sm:$0xff]  }
   0x9   :  { %279 = vmatprep.mubr.bf16.mxu0 %v42_v16  ;;  %1002 = vmatprep.subr.bf16.mxu1 %v1075_v19  ;;  %v1049_v23 = vld [vmem:[%s1588_s2 + $0x84] ss:$8 sps:$4 sm:$0xff]   ;;  %v1051_v24 = vld [vmem:[%s1588_s2 + $0x80] ss:$8 sps:$4 sm:$0xff]   ;;  %v1052_v27 = vld [vmem:[%s1588_s2 + $0x94] ss:$8 sps:$4 sm:$0xff]  }
   0xa   :  { %v1054_v28 = vld [vmem:[%s1588_s2 + $0x90] ss:$8 sps:$4 sm:$0xff]   ;;  %v1055_v30 = vld [vmem:[%s1588_s2 + $0xa4] ss:$8 sps:$4 sm:$0xff]   ;;  %v1057_v33 = vld [vmem:[%s1588_s2 + $0xa0] ss:$8 sps:$4 sm:$0xff]  }
   0xb   :  { %252 = vmatpush1.bf16.msra.mxu0 %v1033_v5  ;;  %v1080_v29 = vld [vmem:[%s1590_s4 + $0x18] sm:$0xff]   ;;  %v1081_v31 = vld [vmem:[%s1590_s4 + $0x60] sm:$0xff]   ;;  %v1083_v34 = vld [vmem:[%s1590_s4 + $0x68] sm:$0xff]  }
   0xc   :  { %253 = vmatprep.subr.bf16.mxu0 %v1034_v6  ;;  %1003 = vmatpush3.bf16.msra.mxu1 %v1076_v21  ;;  %v1082_v32 = vld [vmem:[%s1590_s4 + $0x20] sm:$0xff]   ;;  %v1058_v35 = vld [vmem:[%s1588_s2 + $0xb4] ss:$8 sps:$4 sm:$0xff]   ;;  %v1084_v36 = vld [vmem:[%s1590_s4 + $0x28] sm:$0xff]  }
   0xd   :  { %1004 = vmatprep.subr.bf16.mxu1 %v1077_v22  ;;  %v1060_v37 = vld [vmem:[%s1588_s2 + $0xb0] ss:$8 sps:$4 sm:$0xff]   ;;  %v1061_v38 = vld [vmem:[%s1588_s2 + $0xc4] ss:$8 sps:$4 sm:$0xff]   ;;  %v1063_v39 = vld [vmem:[%s1588_s2 + $0xc0] ss:$8 sps:$4 sm:$0xff]  }
   0xe   :  { %v1064_v40 = vld [vmem:[%s1588_s2 + $0xd4] ss:$8 sps:$4 sm:$0xff]   ;;  %v1066_v41 = vld [vmem:[%s1588_s2 + $0xd0] ss:$8 sps:$4 sm:$0xff]   ;;  %v1067_v42 = vld [vmem:[%s1588_s2 + $0xe4] ss:$8 sps:$4 sm:$0xff]  }
   0xf   :  { %254 = vmatpush1.bf16.msra.mxu0 %v1036_v7 }
  0x10   :  { %255 = vmatprep.subr.bf16.mxu0 %v1037_v8  ;;  %1005 = vmatpush3.bf16.msra.mxu1 %v1078_v25 }
  0x11   :  { %1006 = vmatprep.subr.bf16.mxu1 %v1079_v26 }
  0x13   :  { %256 = vmatpush1.bf16.msra.mxu0 %v1039_v9 }
  0x14   :  { %257 = vmatprep.subr.bf16.mxu0 %v1040_v10  ;;  %1007 = vmatpush3.bf16.msra.mxu1 %v1080_v29 }
  0x15   :  { %1008 = vmatprep.subr.bf16.mxu1 %v1081_v31 }
  0x17   :  { %258 = vmatpush1.bf16.msra.mxu0 %v1042_v11 }
  0x18   :  { %259 = vmatprep.subr.bf16.mxu0 %v1043_v12  ;;  %1009 = vmatpush3.bf16.msra.mxu1 %v1082_v32 }
  0x19   :  { %1010 = vmatprep.subr.bf16.mxu1 %v1083_v34 }
  0x1b   :  { %260 = vmatpush1.bf16.msra.mxu0 %v1045_v13 }
  0x1c   :  { %261 = vmatprep.subr.bf16.mxu0 %v1046_v15  ;;  %1011 = vmatpush3.bf16.msra.mxu1 %v1084_v36 }
  0x1f   :  { %262 = vmatpush1.bf16.msra.mxu0 %v1048_v20 }
  0x20   :  { %263 = vmatprep.subr.bf16.mxu0 %v1049_v23 }
  0x23   :  { %264 = vmatpush1.bf16.msra.mxu0 %v1051_v24 }
  0x24   :  { %265 = vmatprep.subr.bf16.mxu0 %v1052_v27 }
  0x27   :  { %266 = vmatpush1.bf16.msra.mxu0 %v1054_v28 }
  0x28   :  { %267 = vmatprep.subr.bf16.mxu0 %v1055_v30 }
  0x2b   :  { %268 = vmatpush1.bf16.msra.mxu0 %v1057_v33 }
  0x2c   :  { %269 = vmatprep.subr.bf16.mxu0 %v1058_v35 }
  0x2f   :  { %270 = vmatpush1.bf16.msra.mxu0 %v1060_v37 }
  0x30   :  { %271 = vmatprep.subr.bf16.mxu0 %v1061_v38 }
  0x33   :  { %272 = vmatpush1.bf16.msra.mxu0 %v1063_v39 }
  0x34   :  { %273 = vmatprep.subr.bf16.mxu0 %v1064_v40 }
  0x35   :  { %17 = vsyncpa [#allocation3], 0  ;;  %v1069_v43 = vld [vmem:[%s1588_s2 + $0xe0] ss:$8 sps:$4 sm:$0xff]   ;;  %v1070_v44 = vld [vmem:[%s1588_s2 + $0xf4] ss:$8 sps:$4 sm:$0xff]   ;;  %v77_v54 = vlaneseq }
  0x36   :  { %v1072_v45 = vld [vmem:[%s1588_s2 + $0xf0] ss:$8 sps:$4 sm:$0xff]   ;;  %v39_v46 = vld [vmem:[%s1586_s0] sm:$0xff]  ;;  %s1189_s24 = smov 64   ;;  %v1094_v8 = vld [vmem:[%s1592_s6 + $0x14] ss:$8 sps:$4 sm:$0xff]  }
  0x37   :  { %274 = vmatpush1.bf16.msra.mxu0 %v1066_v41  ;;  %v41_v47 = vpack.c.bf16 %v39_v46, %v39_v46  ;;  %v1085_v48 = vld [vmem:[%s1590_s4 + $0x70] sm:$0xff]   ;;  %v1087_v50 = vld [vmem:[%s1590_s4 + $0x78] sm:$0xff]   ;;  %v468_v52 = vld [vmem:[%s1587_s1] sm:$0xff]  ;;  %v78_v55 = vshrl.u32 %v77_v54, 7  ;;  %v1190_v22 = vmov 0   ;;  %vm473_vm0 = vcmask 523264  }
  0x38   :  { %275 = vmatprep.subr.bf16.mxu0 %v1067_v42  ;;  %v1086_v49 = vld [vmem:[%s1590_s4 + $0x30] sm:$0xff]   ;;  %1012 = vmatprep.subr.bf16.mxu1 %v1085_v48  ;;  %v1088_v51 = vld [vmem:[%s1590_s4 + $0x38] sm:$0xff]   ;;  %v1091_v53 = vld [vmem:[%s1592_s6 + $0x4] ss:$8 sps:$4 sm:$0xff]  }
  0x39   :  { %1013 = vmatpush3.bf16.msra.mxu1 %v1086_v49  ;;  %470 = vrot.lane.b32.xlu0 %v468_v52, %s1189_s24  ;;  %v1408_v56 = vsub.s32 0, %v78_v55  ;;  %v75_v57 = vld [vmem:[%s1589_s3] sm:$0x3]  ;;  %v1413_v58 = vsub.s32 1, %v78_v55  ;;  %v1092_v9 = vld [vmem:[%s1592_s6 + $0x10] ss:$8 sps:$4 sm:$0xff]  }
  0x3a   :  { %1014 = vmatprep.subr.bf16.mxu1 %v1087_v50  ;;  %v1089_v6 = vld [vmem:[%s1592_s6] ss:$8 sps:$4 sm:$0xff]   ;;  %v1097_v10 = vld [vmem:[%s1592_s6 + $0x24] ss:$8 sps:$4 sm:$0xff]   ;;  %v1100_v12 = vld [vmem:[%s1592_s6 + $0x34] ss:$8 sps:$4 sm:$0xff]  }
  0x3b   :  { %276 = vmatpush1.bf16.msra.mxu0 %v1069_v43  ;;  %v80_v59 = vrot.slane %v75_v57, %v1408_v56  ;;  %v84_v60 = vrot.slane %v75_v57, %v1413_v58  ;;  %v1095_v11 = vld [vmem:[%s1592_s6 + $0x20] ss:$8 sps:$4 sm:$0xff]   ;;  %v1098_v13 = vld [vmem:[%s1592_s6 + $0x30] ss:$8 sps:$4 sm:$0xff]   ;;  %v1103_v14 = vld [vmem:[%s1592_s6 + $0x44] ss:$8 sps:$4 sm:$0xff]  }
  0x3c   :  { %277 = vmatprep.subr.bf16.mxu0 %v1070_v44  ;;  %v1101_v15 = vld [vmem:[%s1592_s6 + $0x40] ss:$8 sps:$4 sm:$0xff]   ;;  %v1106_v16 = vld [vmem:[%s1592_s6 + $0x54] ss:$8 sps:$4 sm:$0xff]   ;;  %v1104_v17 = vld [vmem:[%s1592_s6 + $0x50] ss:$8 sps:$4 sm:$0xff]  }
  0x3d   :  { %1015 = vmatpush3.bf16.msra.mxu1 %v1088_v51  ;;  %v1109_v18 = vld [vmem:[%s1592_s6 + $0x64] ss:$8 sps:$4 sm:$0xff]   ;;  %v1107_v19 = vld [vmem:[%s1592_s6 + $0x60] ss:$8 sps:$4 sm:$0xff]   ;;  %v1112_v20 = vld [vmem:[%s1592_s6 + $0x74] ss:$8 sps:$4 sm:$0xff]  }
  0x3e   :  { %585 = vmatprep.subr.bf16.mxu1 %v1091_v53  ;;  %v1110_v21 = vld [vmem:[%s1592_s6 + $0x70] ss:$8 sps:$4 sm:$0xff]   ;;  %v1113_v23 = vld [vmem:[%s1594_s8] ss:$8 sps:$4 sm:$0xff]   ;;  %v1115_v24 = vld [vmem:[%s1594_s8 + $0x4] ss:$8 sps:$4 sm:$0xff]  }
  0x3f   :  { %278 = vmatpush1.bf16.msra.mxu0 %v1072_v45  ;;  %v1118_v25 = vld [vmem:[%s1594_s8 + $0x14] ss:$8 sps:$4 sm:$0xff]   ;;  %v1116_v26 = vld [vmem:[%s1594_s8 + $0x10] ss:$8 sps:$4 sm:$0xff]   ;;  %v1121_v27 = vld [vmem:[%s1594_s8 + $0x24] ss:$8 sps:$4 sm:$0xff]  }
  0x40   :  { %834 = vmatprep.subr.bf16.mxu0 %v1115_v24  ;;  %v1119_v28 = vld [vmem:[%s1594_s8 + $0x20] ss:$8 sps:$4 sm:$0xff]   ;;  %v1124_v29 = vld [vmem:[%s1594_s8 + $0x34] ss:$8 sps:$4 sm:$0xff]   ;;  %v1122_v30 = vld [vmem:[%s1594_s8 + $0x30] ss:$8 sps:$4 sm:$0xff]  }
  0x41   :  { %v1127_v31 = vld [vmem:[%s1594_s8 + $0x44] ss:$8 sps:$4 sm:$0xff]   ;;  %v1125_v32 = vld [vmem:[%s1594_s8 + $0x40] ss:$8 sps:$4 sm:$0xff]   ;;  %v1130_v33 = vld [vmem:[%s1594_s8 + $0x54] ss:$8 sps:$4 sm:$0xff]  }
  0x42   :  { %280 = vmatmul.mubr.bf16.vlgmr.msra.gmra.mrb[0].mxu0 %v41_v47  ;;  %v1128_v34 = vld [vmem:[%s1594_s8 + $0x50] ss:$8 sps:$4 sm:$0xff]   ;;  %v1133_v35 = vld [vmem:[%s1594_s8 + $0x64] ss:$8 sps:$4 sm:$0xff]   ;;  %v1131_v36 = vld [vmem:[%s1594_s8 + $0x60] ss:$8 sps:$4 sm:$0xff]  }
  0x43   :  { %835 = vmatpush1.bf16.msra.mxu0 %v1113_v23  ;;  %v1136_v37 = vld [vmem:[%s1594_s8 + $0x74] ss:$8 sps:$4 sm:$0xff]   ;;  %v1134_v38 = vld [vmem:[%s1594_s8 + $0x70] ss:$8 sps:$4 sm:$0xff]   ;;  %v1139_v39 = vld [vmem:[%s1594_s8 + $0x84] ss:$8 sps:$4 sm:$0xff]  }
  0x44   :  { %836 = vmatprep.subr.bf16.mxu0 %v1118_v25  ;;  %v1137_v40 = vld [vmem:[%s1594_s8 + $0x80] ss:$8 sps:$4 sm:$0xff]   ;;  %v1142_v41 = vld [vmem:[%s1594_s8 + $0x94] ss:$8 sps:$4 sm:$0xff]   ;;  %v1140_v42 = vld [vmem:[%s1594_s8 + $0x90] ss:$8 sps:$4 sm:$0xff]  }
  0x45   :  { %v1145_v43 = vld [vmem:[%s1594_s8 + $0xa4] ss:$8 sps:$4 sm:$0xff]   ;;  %v1143_v44 = vld [vmem:[%s1594_s8 + $0xa0] ss:$8 sps:$4 sm:$0xff]   ;;  %v1148_v45 = vld [vmem:[%s1594_s8 + $0xb4] ss:$8 sps:$4 sm:$0xff]  }
  0x46   :  { %v1146_v46 = vld [vmem:[%s1594_s8 + $0xb0] ss:$8 sps:$4 sm:$0xff]   ;;  %v1151_v47 = vld [vmem:[%s1594_s8 + $0xc4] ss:$8 sps:$4 sm:$0xff]   ;;  %v1149_v48 = vld [vmem:[%s1594_s8 + $0xc0] ss:$8 sps:$4 sm:$0xff]  }
  0x47   :  { %837 = vmatpush1.bf16.msra.mxu0 %v1116_v26  ;;  %v1154_v49 = vld [vmem:[%s1594_s8 + $0xd4] ss:$8 sps:$4 sm:$0xff]   ;;  %v1152_v50 = vld [vmem:[%s1594_s8 + $0xd0] ss:$8 sps:$4 sm:$0xff]   ;;  %v935_v53 = vld [vmem:[%s1591_s5] ss:$0 sm:$0xff] }
  0x48   :  { %838 = vmatprep.subr.bf16.mxu0 %v1121_v27 }
  0x4b   :  { %839 = vmatpush1.bf16.msra.mxu0 %v1119_v28 }
  0x4c   :  { %840 = vmatprep.subr.bf16.mxu0 %v1124_v29 }
  0x4f   :  { %841 = vmatpush1.bf16.msra.mxu0 %v1122_v30 }
  0x50   :  { %842 = vmatprep.subr.bf16.mxu0 %v1127_v31 }
  0x53   :  { %843 = vmatpush1.bf16.msra.mxu0 %v1125_v32 }
  0x54   :  { %844 = vmatprep.subr.bf16.mxu0 %v1130_v33 }
  0x57   :  { %845 = vmatpush1.bf16.msra.mxu0 %v1128_v34 }
  0x58   :  { %846 = vmatprep.subr.bf16.mxu0 %v1133_v35 }
  0x5b   :  { %847 = vmatpush1.bf16.msra.mxu0 %v1131_v36 }
  0x5c   :  { %848 = vmatprep.subr.bf16.mxu0 %v1136_v37 }
  0x5f   :  { %849 = vmatpush1.bf16.msra.mxu0 %v1134_v38 }
  0x60   :  { %850 = vmatprep.subr.bf16.mxu0 %v1139_v39 }
  0x63   :  { %851 = vmatpush1.bf16.msra.mxu0 %v1137_v40 }
  0x64   :  { %852 = vmatprep.subr.bf16.mxu0 %v1142_v41 }
  0x67   :  { %853 = vmatpush1.bf16.msra.mxu0 %v1140_v42 }
  0x68   :  { %854 = vmatprep.subr.bf16.mxu0 %v1145_v43 }
  0x6b   :  { %855 = vmatpush1.bf16.msra.mxu0 %v1143_v44 }
  0x6c   :  { %856 = vmatprep.subr.bf16.mxu0 %v1148_v45 }
  0x6f   :  { %857 = vmatpush1.bf16.msra.mxu0 %v1146_v46 }
  0x70   :  { %858 = vmatprep.subr.bf16.mxu0 %v1151_v47 }
  0x73   :  { %859 = vmatpush1.bf16.msra.mxu0 %v1149_v48 }
  0x74   :  { %860 = vmatprep.subr.bf16.mxu0 %v1154_v49 }
  0x77   :  { %861 = vmatpush1.bf16.msra.mxu0 %v1152_v50 }
  0xab   :  { %v471_v52 = vpop.permute.xlu0 %470 }
 0x115   :  { %v281_v61 = vpop.f32.mrb[0].mxu0 }
 0x116   :  { %v282_v62 = vadd.f32 %v281_v61, %v80_v59  ;;  %v283_v63 = vpop.f32.mrb[1].mxu0 }
 0x117   :  { %v284_v0 = vadd.f32 %v283_v63, %v84_v60  ;;  %v285_v1 = vpop.f32.mrb[2].mxu0  ;;  %v474_v60 = vsel %vm473_vm0, 1.0, %v471_v52 }
 0x118   :  { %v288_v2 = vmax.f32 %v282_v62, 0.0  ;;  %v286_v3 = vpop.f32.mrb[3].mxu0  ;;  %v1155_v1 = vld [vmem:[%s1594_s8 + $0xe0] ss:$8 sps:$4 sm:$0xff]  }
 0x119   :  { %v289_v4 = vmax.f32 %v284_v0, 0.0  ;;  %v1157_v0 = vld [vmem:[%s1594_s8 + $0xe4] ss:$8 sps:$4 sm:$0xff]   ;;  %v1158_v3 = vld [vmem:[%s1594_s8 + $0xf0] ss:$8 sps:$4 sm:$0xff]  }
 0x11a   :  { %v290_v7 = vpack.c.bf16 %v288_v2, %v288_v2  ;;  %862 = vmatprep.subr.bf16.mxu0 %v1157_v0  ;;  %v1160_v2 = vld [vmem:[%s1594_s8 + $0xf4] ss:$8 sps:$4 sm:$0xff]  }
 0x11b   :  { %v291_v5 = vpack.c.bf16 %v289_v4, %v289_v4  ;;  %863 = vmatpush1.bf16.msra.mxu0 %v1155_v1  ;;  %v493_v4 = vld [vmem:[%s1593_s7] sm:$0x3]  ;;  %s1191_s7 = smov [#allocation2]  }
 0x11c   :  { %864 = vmatprep.subr.bf16.mxu0 %v1160_v2  ;;  %s891_s1 = sshll.u32 %s1191_s7, 4  ;;  %s892_s1 = int_to_ptr.vmem [resolvable:$true] %s891_s1 }
 0x11d   :  { %459 = vmatprep.mubr.bf16.mxu1 %v291_v5  ;;  %v498_v5 = vrot.slane %v493_v4, %v1408_v56  ;;  %p1170_p1 = scmp.lt.s32.totalorder %s892_s1, %s892_s1 }
 0x11e   :  { %460 = vmatmul.mubr.bf16.vlgmr.msra.gmra.mrb[0].mxu1 %v290_v7 }
 0x11f   :  { %586 = vmatpush1.bf16.msra.mxu1 %v1089_v6  ;;  %617 = vmatprep.mubr.bf16.mxu1 %v1190_v22  ;;  %v502_v6 = vrot.slane %v493_v4, %v1413_v58 }
 0x120   :  { %587 = vmatprep.subr.bf16.mxu1 %v1094_v8  ;;  %865 = vmatpush1.bf16.msra.mxu0 %v1158_v3 }
 0x123   :  { %588 = vmatpush1.bf16.msra.mxu1 %v1092_v9 }
 0x124   :  { %589 = vmatprep.subr.bf16.mxu1 %v1097_v10 }
 0x127   :  { %590 = vmatpush1.bf16.msra.mxu1 %v1095_v11 }
 0x128   :  { %591 = vmatprep.subr.bf16.mxu1 %v1100_v12 }
 0x12b   :  { %592 = vmatpush1.bf16.msra.mxu1 %v1098_v13 }
 0x12c   :  { %593 = vmatprep.subr.bf16.mxu1 %v1103_v14 }
 0x12f   :  { %594 = vmatpush1.bf16.msra.mxu1 %v1101_v15 }
 0x130   :  { %595 = vmatprep.subr.bf16.mxu1 %v1106_v16 }
 0x133   :  { %596 = vmatpush1.bf16.msra.mxu1 %v1104_v17  ;;  %v662_v17 = vld [vmem:[%s1595_s9] sm:$0x3]  ;;  %s1165_s9 = scalar_lea.vmem %s892_s1, 256 }
 0x134   :  { %597 = vmatprep.subr.bf16.mxu1 %v1109_v18  ;;  %v667_v18 = vrot.slane %v662_v17, %v1408_v56  ;;  %p1166_p0 = scmp.ne.s32.totalorder %s892_s1, %s1165_s9  ;;  %p1171_p2 = scmp.lt.s32.totalorder %s1165_s9, %s1165_s9 }
 0x136   :  { %p1172_p3 = por %p1171_p2, %p1170_p1 }
 0x137   :  { %598 = vmatpush1.bf16.msra.mxu1 %v1107_v19  ;;  %v671_v19 = vrot.slane %v662_v17, %v1413_v58 }
 0x138   :  { %599 = vmatprep.subr.bf16.mxu1 %v1112_v20  ;;  %p1173_p4 = pnand %p1172_p3, %p1166_p0 }
 0x13b   :  { %600 = vmatpush1.bf16.msra.mxu1 %v1110_v21 }
 0x1f1   :  { %v1016_v51 = vpop.f32.mrb[0].mxu1 }
 0x1f2   :  { %v1017_v54 = vpop.f32.mrb[1].mxu1 }
 0x1f3   :  { %v1018_v55 = vadd.f32 %v1017_v54, %v1016_v51  ;;  %v1019_v57 = vpop.f32.mrb[2].mxu1 }
 0x1f4   :  { %v1020_v59 = vpop.f32.mrb[3].mxu1 }
 0x1f5   :  { %v462_v61 = vadd.f32 %v1018_v55, %v935_v53 }
 0x1f7   :  { %467 = vst [vmem:[%s1597_s11] sm:$0xff] %v462_v61  ;;  %v475_v62 = vmul.f32 %v474_v60, %v462_v61 }
 0x1f9   :  { %v476_v63 = vpack.c.bf16 %v475_v62, %v475_v62 }
 0x1fb   :  { %618 = vmatmul.mubr.bf16.vlgmr.msra.gmra.mrb[4].mxu1 %v476_v63 }
 0x2ce   :  { %v619_v7 = vpop.f32.mrb[4].mxu1 }
 0x2cf   :  { %v620_v8 = vadd.f32 %v619_v7, %v498_v5  ;;  %v621_v9 = vpop.f32.mrb[5].mxu1 }
 0x2d0   :  { %v622_v10 = vadd.f32 %v621_v9, %v502_v6  ;;  %v623_v11 = vpop.f32.mrb[6].mxu1 }
 0x2d1   :  { %v626_v12 = vmax.f32 %v620_v8, 0.0  ;;  %v624_v13 = vpop.f32.mrb[7].mxu1 }
 0x2d2   :  { %v627_v14 = vmax.f32 %v622_v10, 0.0 }
 0x2d3   :  { %v628_v16 = vpack.c.bf16 %v626_v12, %v626_v12 }
 0x2d4   :  { %v629_v15 = vpack.c.bf16 %v627_v14, %v627_v14 }
 0x2d6   :  { %866 = vmatprep.mubr.bf16.mxu0 %v629_v15 }
 0x2d7   :  { %867 = vmatmul.mubr.bf16.vlgmr.msra.gmra.mrb[4].mxu0 %v628_v16 }
 0x3aa   :  { %v868_v20 = vpop.f32.mrb[4].mxu0 }
 0x3ab   :  { %v869_v21 = vadd.f32 %v868_v20, %v667_v18  ;;  %v870_v22 = vpop.f32.mrb[5].mxu0 }
 0x3ac   :  { %v871_v23 = vadd.f32 %v870_v22, %v671_v19  ;;  %v872_v24 = vpop.f32.mrb[6].mxu0 }
 0x3ad   :  { %v875_v25 = vmul.f32 0.5, %v869_v21  ;;  %v873_v26 = vpop.f32.mrb[7].mxu0 }
 0x3ae   :  { %v876_v27 = vmul.f32 0.5, %v871_v23 }
 0x3af   :  { %1161 = vtanh.f32 %v875_v25 }
 0x3b0   :  { %1163 = vtanh.f32 %v876_v27 }
 0x3b9   :  { %v1162_v28 = vpop.eup %1161 }
 0x3ba   :  { %v1164_v29 = vpop.eup %1163  ;;  %v879_v30 = vadd.f32 1.0, %v1162_v28 }
 0x3bb   :  { %v880_v31 = vadd.f32 1.0, %v1164_v29 }
 0x3bc   :  { %v881_v32 = vmul.f32 0.5, %v879_v30 }
 0x3bd   :  { %v882_v56 = vmul.f32 0.5, %v880_v31 }
 0x3be   :  { %883 = vst [vmem:[#allocation2] sm:$0xff] %v881_v32 }
 0x3bf   :  { %884 = vst [vmem:[#allocation2 + $0x8] sm:$0xff] %v882_v56 }
 0x3c0   :  { %1176 = shalt.err (!%p1173_p4)
}
 0x3c1   :  { %s1177_s27 = scalar_lea.hbm %s1596_s10, 256 }
 0x3c2   :  { %p1178_p5 = scmp.ne.s32.totalorder %s1596_s10, %s1177_s27  ;;  %p1181_p6 = scmp.lt.u32.totalorder %s1177_s27, %s1596_s10 }
 0x3c4   :  { %p1183_p7 = pnand %p1181_p6, %p1178_p5 }
 0x3c6   :  { %1186 = shalt.err (!%p1183_p7)
}
 0x3c7   :  { %894 = dma.vmem_to_hbm [thread:$0]  %s892_s1, 256, %s1596_s10, [#allocation3]  }
 0x3c8   :  { %1187 = dma.done.wait [#allocation3], 256  }
 0x3c9   :  { %1188 = vsyncadd [#allocation3], 4294967040 }
 0x3ca   :  { %902 = vsyncpa [#allocation3], 1 }

</bundles_post_ra>
